<compile_context>
chip_gen: v7x
topology: tpu7x:2x2x1
jax: 0.10.0
libtpu: 0.0.40
codegen_flags: <defaults>
</compile_context>

<pallas_src>
import functools

import jax
import jax.numpy as jnp
from jax.experimental import pallas as pl
from jax.experimental.pallas import tpu as pltpu

LANE = 128


def _round_up(x, m):
    return ((x + m - 1) // m) * m


def fc_q_kernel(x_ref, w1_ref, b1_ref, w2_ref, b2_ref, w3_ref, b3_ref, out_ref):
    # layer 1: relu(x @ W1 + b1)
    q = jnp.dot(x_ref[...], w1_ref[...], preferred_element_type=jnp.float32)
    q = jnp.maximum(q + b1_ref[...], 0.0)
    # layer 2: relu(q @ W2 + b2)
    q = jnp.dot(q, w2_ref[...], preferred_element_type=jnp.float32)
    q = jnp.maximum(q + b2_ref[...], 0.0)
    # layer 3: q @ W3 + b3 (no activation); W3/b3 are zero-padded so the store
    # below is a full-lane (128-multiple) unmasked writeback.
    q = jnp.dot(q, w3_ref[...], preferred_element_type=jnp.float32)
    out_ref[...] = (q + b3_ref[...]).astype(out_ref.dtype)


@functools.partial(jax.jit, static_argnames=("block_b",))
def fc_q_forward(state, w1, b1, w2, b2, w3, b3, *, block_b=256):
    """state: (B, state_dim) f32.  Returns (B, num_actions) f32.

    For large-batch serving, cast state/weights to bf16 before calling (the
    three dots keep f32 accumulation via preferred_element_type).
    """
    B, state_dim = state.shape
    hidden = w1.shape[1]
    num_actions = w3.shape[1]

    # --- lane-dense final layer: zero-pad W3 / b3 to a 128-multiple width ---
    n_pad = _round_up(max(num_actions, LANE), LANE)
    if n_pad != num_actions:
        w3 = jnp.zeros((hidden, n_pad), w3.dtype).at[:, :num_actions].set(w3)
        b3 = jnp.zeros((1, n_pad), b3.dtype).at[:, :num_actions].set(b3)

    # --- batch grid: tile aligned to 128 (v5e MXU) / 256 (v6e, v7x MXU) ------
    tb = min(block_b, _round_up(B, LANE))
    b_pad = _round_up(B, tb)
    if b_pad != B:
        state = jnp.zeros((b_pad, state_dim), state.dtype).at[:B].set(state)

    batch_spec = lambda cols: pl.BlockSpec((tb, cols), lambda i: (i, 0))
    resident = lambda shape: pl.BlockSpec(shape, lambda i: (0, 0))

    out = pl.pallas_call(
        fc_q_kernel,
        out_shape=jax.ShapeDtypeStruct((b_pad, n_pad), jnp.float32),
        grid=(b_pad // tb,),
        in_specs=[
            batch_spec(state_dim),              # x: tiled over batch
            resident((state_dim, hidden)),      # W1 (resident)
            resident((1, hidden)),              # b1
            resident((hidden, hidden)),         # W2
            resident((1, hidden)),              # b2
            resident((hidden, n_pad)),          # W3 (lane-padded)
            resident((1, n_pad)),               # b3 (lane-padded)
        ],
        out_specs=batch_spec(n_pad),
        compiler_params=pltpu.CompilerParams(
            # batch axis is independent -> shard across v7x's two TensorCores
            dimension_semantics=("parallel",),
        ),
    )(state, w1, b1, w2, b2, w3, b3)

    return out[:B, :num_actions]


def init_fc_q_params(key, state_dim, num_actions):
    """Deterministic init mimicking PyTorch nn.Linear default (uniform +/- 1/sqrt(fan_in)).
    Weights are returned as (in_features, out_features)."""
    ks = jax.random.split(key, 6)

    def linear(kw, kb, fan_in, fan_out):
        bound = 1.0 / jnp.sqrt(jnp.float32(fan_in))
        w = jax.random.uniform(kw, (fan_in, fan_out), jnp.float32, -bound, bound)
        b = jax.random.uniform(kb, (1, fan_out), jnp.float32, -bound, bound)
        return w, b

    w1, b1 = linear(ks[0], ks[1], state_dim, 256)
    w2, b2 = linear(ks[2], ks[3], 256, 256)
    w3, b3 = linear(ks[4], ks[5], 256, num_actions)
    return w1, b1, w2, b2, w3, b3


def fc_q_reference(state, w1, b1, w2, b2, w3, b3):
    q = jnp.maximum(state @ w1 + b1, 0.0)
    q = jnp.maximum(q @ w2 + b2, 0.0)
    return q @ w3 + b3


if __name__ == "__main__":
    key = jax.random.PRNGKey(0)
    k_params, k_state = jax.random.split(key)

    batch = 8
    state_dim = 32
    num_actions = 4

    params = init_fc_q_params(k_params, state_dim, num_actions)
    state = jax.random.normal(k_state, (batch, state_dim), jnp.float32)

    out = fc_q_forward(state, *params)
    out = jax.block_until_ready(out)

    ref = fc_q_reference(state, *params)
    assert out.shape == (batch, num_actions)
    assert jnp.allclose(out, ref, atol=1e-4, rtol=1e-4)

    # also exercise a batch that spans multiple grid steps / non-multiple of TB
    big_state = jax.random.normal(k_state, (300, state_dim), jnp.float32)
    big_out = jax.block_until_ready(fc_q_forward(big_state, *params))
    big_ref = fc_q_reference(big_state, *params)
    assert big_out.shape == (300, num_actions)
    assert jnp.allclose(big_out, big_ref, atol=1e-4, rtol=1e-4)

    print("KERNEL_OK")
</pallas_src>

<mosaic_0001>
module attributes {stable_mosaic.version = 11 : i64} {
  func.func @fc_q_kernel(%arg0: i32, %arg1: memref<128x32xf32, #tpu.memory_space<vmem>>, %arg2: memref<32x256xf32, #tpu.memory_space<vmem>>, %arg3: memref<1x256xf32, #tpu.memory_space<vmem>>, %arg4: memref<256x256xf32, #tpu.memory_space<vmem>>, %arg5: memref<1x256xf32, #tpu.memory_space<vmem>>, %arg6: memref<256x128xf32, #tpu.memory_space<vmem>>, %arg7: memref<1x128xf32, #tpu.memory_space<vmem>>, %arg8: memref<128x128xf32, #tpu.memory_space<vmem>>) attributes {dimension_semantics = [#tpu.dimension_semantics<parallel>], iteration_bounds = array<i64: 1>, scalar_prefetch = 0 : i64, scratch_operands = 0 : i64, tpu.core_type = #tpu.core_type<tc>, window_params = [{transform_indices = @transform_0, window_bounds = array<i64: 128, 32>}, {pipeline_mode = #tpu.pipeline_mode<synchronous>, transform_indices = @transform_1, window_bounds = array<i64: 32, 256>}, {pipeline_mode = #tpu.pipeline_mode<synchronous>, transform_indices = @transform_2, window_bounds = array<i64: 1, 256>}, {pipeline_mode = #tpu.pipeline_mode<synchronous>, transform_indices = @transform_3, window_bounds = array<i64: 256, 256>}, {pipeline_mode = #tpu.pipeline_mode<synchronous>, transform_indices = @transform_4, window_bounds = array<i64: 1, 256>}, {pipeline_mode = #tpu.pipeline_mode<synchronous>, transform_indices = @transform_5, window_bounds = array<i64: 256, 128>}, {pipeline_mode = #tpu.pipeline_mode<synchronous>, transform_indices = @transform_6, window_bounds = array<i64: 1, 128>}, {transform_indices = @transform_7, window_bounds = array<i64: 128, 128>}]} {
    %c0 = arith.constant 0 : index
    %c0_0 = arith.constant 0 : index
    %0 = vector.load %arg1[%c0, %c0_0] : memref<128x32xf32, #tpu.memory_space<vmem>>, vector<128x32xf32>
    %c0_1 = arith.constant 0 : index
    %c0_2 = arith.constant 0 : index
    %1 = vector.load %arg2[%c0_1, %c0_2] : memref<32x256xf32, #tpu.memory_space<vmem>>, vector<32x256xf32>
    %cst = arith.constant dense<0.000000e+00> : vector<128x256xf32>
    %2 = tpu.matmul %0, %1, %cst {dimension_numbers = #tpu.dot_dimension_numbers<[1], [0], [0], [1], [0, 0, 1, 1], [], []>} : vector<128x32xf32>, vector<32x256xf32>, vector<128x256xf32> -> vector<128x256xf32>
    %c0_3 = arith.constant 0 : index
    %c0_4 = arith.constant 0 : index
    %3 = vector.load %arg3[%c0_3, %c0_4] : memref<1x256xf32, #tpu.memory_space<vmem>>, vector<1x256xf32>
    %4 = vector.broadcast %3 : vector<1x256xf32> to vector<128x256xf32>
    %5 = arith.addf %2, %4 : vector<128x256xf32>
    %cst_5 = arith.constant 0.000000e+00 : f32
    %6 = vector.broadcast %cst_5 : f32 to vector<128x256xf32>
    %7 = arith.maximumf %5, %6 : vector<128x256xf32>
    %c0_6 = arith.constant 0 : index
    %c0_7 = arith.constant 0 : index
    %8 = vector.load %arg4[%c0_6, %c0_7] : memref<256x256xf32, #tpu.memory_space<vmem>>, vector<256x256xf32>
    %cst_8 = arith.constant dense<0.000000e+00> : vector<128x256xf32>
    %9 = tpu.matmul %7, %8, %cst_8 {dimension_numbers = #tpu.dot_dimension_numbers<[1], [0], [0], [1], [0, 0, 1, 1], [], []>} : vector<128x256xf32>, vector<256x256xf32>, vector<128x256xf32> -> vector<128x256xf32>
    %c0_9 = arith.constant 0 : index
    %c0_10 = arith.constant 0 : index
    %10 = vector.load %arg5[%c0_9, %c0_10] : memref<1x256xf32, #tpu.memory_space<vmem>>, vector<1x256xf32>
    %11 = vector.broadcast %10 : vector<1x256xf32> to vector<128x256xf32>
    %12 = arith.addf %9, %11 : vector<128x256xf32>
    %cst_11 = arith.constant 0.000000e+00 : f32
    %13 = vector.broadcast %cst_11 : f32 to vector<128x256xf32>
    %14 = arith.maximumf %12, %13 : vector<128x256xf32>
    %c0_12 = arith.constant 0 : index
    %c0_13 = arith.constant 0 : index
    %15 = vector.load %arg6[%c0_12, %c0_13] : memref<256x128xf32, #tpu.memory_space<vmem>>, vector<256x128xf32>
    %cst_14 = arith.constant dense<0.000000e+00> : vector<128x128xf32>
    %16 = tpu.matmul %14, %15, %cst_14 {dimension_numbers = #tpu.dot_dimension_numbers<[1], [0], [0], [1], [0, 0, 1, 1], [], []>} : vector<128x256xf32>, vector<256x128xf32>, vector<128x128xf32> -> vector<128x128xf32>
    %c0_15 = arith.constant 0 : index
    %c0_16 = arith.constant 0 : index
    %17 = vector.load %arg7[%c0_15, %c0_16] : memref<1x128xf32, #tpu.memory_space<vmem>>, vector<1x128xf32>
    %18 = vector.broadcast %17 : vector<1x128xf32> to vector<128x128xf32>
    %19 = arith.addf %16, %18 : vector<128x128xf32>
    %c0_17 = arith.constant 0 : index
    %c0_18 = arith.constant 0 : index
    %20 = vector.load %arg8[%c0_17, %c0_18] : memref<128x128xf32, #tpu.memory_space<vmem>>, vector<128x128xf32>
    tpu.vector_store %arg8[%c0_17, %c0_18], %19 {strides = array<i32>} : memref<128x128xf32, #tpu.memory_space<vmem>>, vector<128x128xf32>,
    return
  }
  func.func @transform_0(%arg0: i32) -> (i32, i32) {
    %c0_i32 = arith.constant 0 : i32
    %c0_i32_0 = arith.constant 0 : i32
    return %arg0, %c0_i32 : i32, i32
  }
  func.func @transform_1(%arg0: i32) -> (i32, i32) {
    %c0_i32 = arith.constant 0 : i32
    %c0_i32_0 = arith.constant 0 : i32
    %c0_i32_1 = arith.constant 0 : i32
    return %c0_i32, %c0_i32_0 : i32, i32
  }
  func.func @transform_2(%arg0: i32) -> (i32, i32) {
    %c0_i32 = arith.constant 0 : i32
    %c0_i32_0 = arith.constant 0 : i32
    %c0_i32_1 = arith.constant 0 : i32
    return %c0_i32, %c0_i32_0 : i32, i32
  }
  func.func @transform_3(%arg0: i32) -> (i32, i32) {
    %c0_i32 = arith.constant 0 : i32
    %c0_i32_0 = arith.constant 0 : i32
    %c0_i32_1 = arith.constant 0 : i32
    return %c0_i32, %c0_i32_0 : i32, i32
  }
  func.func @transform_4(%arg0: i32) -> (i32, i32) {
    %c0_i32 = arith.constant 0 : i32
    %c0_i32_0 = arith.constant 0 : i32
    %c0_i32_1 = arith.constant 0 : i32
    return %c0_i32, %c0_i32_0 : i32, i32
  }
  func.func @transform_5(%arg0: i32) -> (i32, i32) {
    %c0_i32 = arith.constant 0 : i32
    %c0_i32_0 = arith.constant 0 : i32
    %c0_i32_1 = arith.constant 0 : i32
    return %c0_i32, %c0_i32_0 : i32, i32
  }
  func.func @transform_6(%arg0: i32) -> (i32, i32) {
    %c0_i32 = arith.constant 0 : i32
    %c0_i32_0 = arith.constant 0 : i32
    %c0_i32_1 = arith.constant 0 : i32
    return %c0_i32, %c0_i32_0 : i32, i32
  }
  func.func @transform_7(%arg0: i32) -> (i32, i32) {
    %c0_i32 = arith.constant 0 : i32
    %c0_i32_0 = arith.constant 0 : i32
    return %arg0, %c0_i32 : i32, i32
  }
}

</mosaic_0001>

<bundles_post_ra>
// kernel: fc_q_forward.1
= control target key start
LH: loop header
LB: loop body
LE: loop exit
PB: predicated region body
PF: predicated region fallthrough
CT: control target
= control target key end

     0   :  { %v995_v3 = vmov 0.0   ;;  %vm62_vm0 = vcmask 261120   ;;  %s1639_s1 = inlined_call_operand.vmem [shape: f32[32,256], index: 1, kind: input, shape index: {}]   ;;  %s1640_s0 = inlined_call_operand.vmem [shape: f32[128,32], index: 0, kind: input, shape index: {}]   ;;  %s1641_s3 = inlined_call_operand.vmem [shape: f32[256,256], index: 3, kind: input, shape index: {}]   ;;  %s1642_s5 = inlined_call_operand.vmem [shape: f32[256,128], index: 5, kind: input, shape index: {}]   ;;  %s1643_s2 = inlined_call_operand.vmem [shape: f32[1,256], index: 2, kind: input, shape index: {}]   ;;  %s1644_s4 = inlined_call_operand.vmem [shape: f32[1,256], index: 4, kind: input, shape index: {}]   ;;  %s1645_s6 = inlined_call_operand.vmem [shape: f32[1,128], index: 6, kind: input, shape index: {}]   ;;  %s1646_s7 = inlined_call_operand.vmem [shape: f32[128,128], index: 7, kind: output, shape index: {}]  }
   0x1   :  { %v43_v0 = vld [vmem:[%s1639_s1 + $0x8] sm:$0xff]  ;;  %v45_v1 = vld [vmem:[%s1639_s1 + $0x18] sm:$0xff]  ;;  %v42_v2 = vld [vmem:[%s1639_s1] sm:$0xff]  ;;  %175 = vmatprep.mubr.f32.mxu0 %v995_v3 }
   0x2   :  { %v874_v4 = vpack.c.bf16 %v45_v1, %v43_v0  ;;  %v44_v5 = vld [vmem:[%s1639_s1 + $0x10] sm:$0xff]  ;;  %v47_v6 = vld [vmem:[%s1639_s1 + $0x28] sm:$0xff]  ;;  %v49_v7 = vld [vmem:[%s1639_s1 + $0x38] sm:$0xff] }
   0x3   :  { %v876_v8 = vpack.c.bf16 %v44_v5, %v42_v2  ;;  %v878_v9 = vpack.c.bf16 %v49_v7, %v47_v6  ;;  %v46_v10 = vld [vmem:[%s1639_s1 + $0x20] sm:$0xff]  ;;  %v48_v11 = vld [vmem:[%s1639_s1 + $0x30] sm:$0xff]  ;;  %v305_v14 = vld [vmem:[%s1641_s3 + $0x8] sm:$0xff] }
   0x4   :  { %875 = vmatprep.subr.bf16.mxu0 %v874_v4  ;;  %v880_v12 = vpack.c.bf16 %v48_v11, %v46_v10  ;;  %v26_v13 = vld [vmem:[%s1640_s0] sm:$0xff]  ;;  %v307_v15 = vld [vmem:[%s1641_s3 + $0x18] sm:$0xff]  ;;  %v306_v18 = vld [vmem:[%s1641_s3 + $0x10] sm:$0xff] }
   0x5   :  { %877 = vmatpush1.bf16.msra.mxu0 %v876_v8  ;;  %v304_v16 = vld [vmem:[%s1641_s3] sm:$0xff]  ;;  %v882_v17 = vpack.c.bf16 %v307_v15, %v305_v14  ;;  %v309_v19 = vld [vmem:[%s1641_s3 + $0x28] sm:$0xff]  ;;  %v311_v20 = vld [vmem:[%s1641_s3 + $0x38] sm:$0xff] }
   0x6   :  { %879 = vmatprep.subr.bf16.mxu0 %v878_v9  ;;  %v884_v21 = vpack.c.bf16 %v306_v18, %v304_v16  ;;  %v886_v22 = vpack.c.bf16 %v311_v20, %v309_v19  ;;  %v308_v23 = vld [vmem:[%s1641_s3 + $0x20] sm:$0xff]  ;;  %v310_v24 = vld [vmem:[%s1641_s3 + $0x30] sm:$0xff]  ;;  %v313_v25 = vld [vmem:[%s1641_s3 + $0x48] sm:$0xff] }
   0x7   :  { %883 = vmatprep.subr.bf16.mxu1 %v882_v17  ;;  %v315_v26 = vld [vmem:[%s1641_s3 + $0x58] sm:$0xff]  ;;  %v27_v27 = vld [vmem:[%s1640_s0 + $0x8] sm:$0xff]  ;;  %v888_v28 = vpack.c.bf16 %v310_v24, %v308_v23  ;;  %v312_v30 = vld [vmem:[%s1641_s3 + $0x40] sm:$0xff] }
   0x8   :  { %885 = vmatpush1.bf16.msra.mxu1 %v884_v21  ;;  %v890_v29 = vpack.c.bf16 %v315_v26, %v313_v25  ;;  %v314_v31 = vld [vmem:[%s1641_s3 + $0x50] sm:$0xff]  ;;  %v317_v32 = vld [vmem:[%s1641_s3 + $0x68] sm:$0xff]  ;;  %v319_v33 = vld [vmem:[%s1641_s3 + $0x78] sm:$0xff] }
   0x9   :  { %881 = vmatpush1.bf16.msra.mxu0 %v880_v12  ;;  %887 = vmatprep.subr.bf16.mxu1 %v886_v22  ;;  %v28_v34 = vld [vmem:[%s1640_s0 + $0x10] sm:$0xff]  ;;  %v892_v35 = vpack.c.bf16 %v314_v31, %v312_v30  ;;  %v894_v36 = vpack.c.bf16 %v319_v33, %v317_v32  ;;  %v316_v37 = vld [vmem:[%s1641_s3 + $0x60] sm:$0xff]  ;;  %v321_v39 = vld [vmem:[%s1641_s3 + $0x88] sm:$0xff] }
   0xa   :  { %v318_v38 = vld [vmem:[%s1641_s3 + $0x70] sm:$0xff]  ;;  %v323_v40 = vld [vmem:[%s1641_s3 + $0x98] sm:$0xff]  ;;  %v320_v44 = vld [vmem:[%s1641_s3 + $0x80] sm:$0xff] }
   0xb   :  { %v29_v41 = vld [vmem:[%s1640_s0 + $0x18] sm:$0xff]  ;;  %v896_v42 = vpack.c.bf16 %v318_v38, %v316_v37  ;;  %v898_v43 = vpack.c.bf16 %v323_v40, %v321_v39  ;;  %v322_v45 = vld [vmem:[%s1641_s3 + $0x90] sm:$0xff]  ;;  %v325_v46 = vld [vmem:[%s1641_s3 + $0xa8] sm:$0xff] }
   0xc   :  { %777 = vmatmul.mubr.msk.f32.vlgmr.msra.gmra.mrb[0].mxu0 %vm62_vm0, %v26_v13  ;;  %889 = vmatpush1.bf16.msra.mxu1 %v888_v28  ;;  %v327_v47 = vld [vmem:[%s1641_s3 + $0xb8] sm:$0xff]  ;;  %v30_v48 = vld [vmem:[%s1640_s0 + $0x20] sm:$0xff]  ;;  %v900_v49 = vpack.c.bf16 %v322_v45, %v320_v44  ;;  %v326_v52 = vld [vmem:[%s1641_s3 + $0xb0] sm:$0xff] }
   0xd   :  { %181 = vmatprep.mubr.f32.mxu0 %v995_v3  ;;  %891 = vmatprep.subr.bf16.mxu1 %v890_v29  ;;  %v902_v50 = vpack.c.bf16 %v327_v47, %v325_v46  ;;  %v324_v51 = vld [vmem:[%s1641_s3 + $0xa0] sm:$0xff]  ;;  %v329_v53 = vld [vmem:[%s1641_s3 + $0xc8] sm:$0xff]  ;;  %v331_v54 = vld [vmem:[%s1641_s3 + $0xd8] sm:$0xff] }
   0xe   :  { %v31_v55 = vld [vmem:[%s1640_s0 + $0x28] sm:$0xff]  ;;  %v904_v56 = vpack.c.bf16 %v326_v52, %v324_v51  ;;  %v906_v57 = vpack.c.bf16 %v331_v54, %v329_v53  ;;  %v328_v58 = vld [vmem:[%s1641_s3 + $0xc0] sm:$0xff]  ;;  %v330_v59 = vld [vmem:[%s1641_s3 + $0xd0] sm:$0xff] }
   0xf   :  { %v333_v60 = vld [vmem:[%s1641_s3 + $0xe8] sm:$0xff]  ;;  %v335_v61 = vld [vmem:[%s1641_s3 + $0xf8] sm:$0xff]  ;;  %v32_v62 = vld [vmem:[%s1640_s0 + $0x30] sm:$0xff]  ;;  %v908_v63 = vpack.c.bf16 %v330_v59, %v328_v58 }
  0x10   :  { %778 = vmatmul.mubr.msk.f32.gmra.mrb[2].mxu0 %vm62_vm0, %v27_v27  ;;  %893 = vmatpush1.bf16.msra.mxu1 %v892_v35  ;;  %v910_v0 = vpack.c.bf16 %v335_v61, %v333_v60  ;;  %v332_v1 = vld [vmem:[%s1641_s3 + $0xe0] sm:$0xff]  ;;  %v334_v2 = vld [vmem:[%s1641_s3 + $0xf0] sm:$0xff]  ;;  %v337_v4 = vld [vmem:[%s1641_s3 + $0x108] sm:$0xff] }
  0x11   :  { %187 = vmatprep.mubr.f32.mxu0 %v995_v3  ;;  %895 = vmatprep.subr.bf16.mxu1 %v894_v36  ;;  %v339_v5 = vld [vmem:[%s1641_s3 + $0x118] sm:$0xff]  ;;  %v912_v7 = vpack.c.bf16 %v334_v2, %v332_v1  ;;  %v336_v9 = vld [vmem:[%s1641_s3 + $0x100] sm:$0xff]  ;;  %v338_v10 = vld [vmem:[%s1641_s3 + $0x110] sm:$0xff] }
  0x12   :  { %v33_v6 = vld [vmem:[%s1640_s0 + $0x38] sm:$0xff]  ;;  %v914_v8 = vpack.c.bf16 %v339_v5, %v337_v4  ;;  %v341_v11 = vld [vmem:[%s1641_s3 + $0x128] sm:$0xff]  ;;  %v34_v13 = vld [vmem:[%s1640_s0 + $0x40] sm:$0xff]  ;;  %v916_v14 = vpack.c.bf16 %v338_v10, %v336_v9 }
  0x13   :  { %v343_v12 = vld [vmem:[%s1641_s3 + $0x138] sm:$0xff]  ;;  %v340_v16 = vld [vmem:[%s1641_s3 + $0x120] sm:$0xff]  ;;  %v342_v17 = vld [vmem:[%s1641_s3 + $0x130] sm:$0xff] }
  0x14   :  { %779 = vmatmul.mubr.msk.f32.gmra.mrb[4].mxu0 %vm62_vm0, %v28_v34  ;;  %897 = vmatpush1.bf16.msra.mxu1 %v896_v42  ;;  %v918_v15 = vpack.c.bf16 %v343_v12, %v341_v11  ;;  %v345_v18 = vld [vmem:[%s1641_s3 + $0x148] sm:$0xff]  ;;  %v347_v19 = vld [vmem:[%s1641_s3 + $0x158] sm:$0xff]  ;;  %v920_v21 = vpack.c.bf16 %v342_v17, %v340_v16  ;;  %v344_v23 = vld [vmem:[%s1641_s3 + $0x140] sm:$0xff] }
  0x15   :  { %193 = vmatprep.mubr.f32.mxu0 %v995_v3  ;;  %899 = vmatprep.subr.bf16.mxu1 %v898_v43  ;;  %v35_v20 = vld [vmem:[%s1640_s0 + $0x48] sm:$0xff]  ;;  %v922_v22 = vpack.c.bf16 %v347_v19, %v345_v18  ;;  %v346_v24 = vld [vmem:[%s1641_s3 + $0x150] sm:$0xff]  ;;  %v351_v26 = vld [vmem:[%s1641_s3 + $0x178] sm:$0xff] }
  0x16   :  { %v349_v25 = vld [vmem:[%s1641_s3 + $0x168] sm:$0xff]  ;;  %v36_v27 = vld [vmem:[%s1640_s0 + $0x50] sm:$0xff]  ;;  %v924_v28 = vpack.c.bf16 %v346_v24, %v344_v23  ;;  %v348_v30 = vld [vmem:[%s1641_s3 + $0x160] sm:$0xff] }
  0x17   :  { %v926_v29 = vpack.c.bf16 %v351_v26, %v349_v25  ;;  %v350_v31 = vld [vmem:[%s1641_s3 + $0x170] sm:$0xff]  ;;  %v353_v32 = vld [vmem:[%s1641_s3 + $0x188] sm:$0xff]  ;;  %v355_v33 = vld [vmem:[%s1641_s3 + $0x198] sm:$0xff] }
  0x18   :  { %780 = vmatmul.mubr.msk.f32.gmra.mrb[6].mxu0 %vm62_vm0, %v29_v41  ;;  %901 = vmatpush1.bf16.msra.mxu1 %v900_v49  ;;  %v37_v34 = vld [vmem:[%s1640_s0 + $0x58] sm:$0xff]  ;;  %v928_v35 = vpack.c.bf16 %v350_v31, %v348_v30  ;;  %v930_v36 = vpack.c.bf16 %v355_v33, %v353_v32  ;;  %v352_v37 = vld [vmem:[%s1641_s3 + $0x180] sm:$0xff]  ;;  %v354_v38 = vld [vmem:[%s1641_s3 + $0x190] sm:$0xff] }
  0x19   :  { %199 = vmatprep.mubr.f32.mxu0 %v995_v3  ;;  %903 = vmatprep.subr.bf16.mxu1 %v902_v50  ;;  %v357_v39 = vld [vmem:[%s1641_s3 + $0x1a8] sm:$0xff]  ;;  %v359_v40 = vld [vmem:[%s1641_s3 + $0x1b8] sm:$0xff]  ;;  %v38_v41 = vld [vmem:[%s1640_s0 + $0x60] sm:$0xff]  ;;  %v932_v42 = vpack.c.bf16 %v354_v38, %v352_v37 }
  0x1a   :  { %v934_v43 = vpack.c.bf16 %v359_v40, %v357_v39  ;;  %v356_v44 = vld [vmem:[%s1641_s3 + $0x1a0] sm:$0xff]  ;;  %v358_v45 = vld [vmem:[%s1641_s3 + $0x1b0] sm:$0xff]  ;;  %v361_v46 = vld [vmem:[%s1641_s3 + $0x1c8] sm:$0xff]  ;;  %v52_v40 = vlaneseq }
  0x1b   :  { %v363_v47 = vld [vmem:[%s1641_s3 + $0x1d8] sm:$0xff]  ;;  %v936_v49 = vpack.c.bf16 %v358_v45, %v356_v44  ;;  %v40_v51 = vld [vmem:[%s1640_s0 + $0x70] sm:$0xff]  ;;  %v360_v53 = vld [vmem:[%s1641_s3 + $0x1c0] sm:$0xff] }
  0x1c   :  { %781 = vmatmul.mubr.msk.f32.gmra.mrb[8].mxu0 %vm62_vm0, %v30_v48  ;;  %905 = vmatpush1.bf16.msra.mxu1 %v904_v56  ;;  %v39_v48 = vld [vmem:[%s1640_s0 + $0x68] sm:$0xff]  ;;  %v938_v50 = vpack.c.bf16 %v363_v47, %v361_v46  ;;  %v41_v52 = vld [vmem:[%s1640_s0 + $0x78] sm:$0xff]  ;;  %v362_v54 = vld [vmem:[%s1641_s3 + $0x1d0] sm:$0xff] }
  0x1d   :  { %205 = vmatprep.mubr.f32.mxu0 %v995_v3  ;;  %907 = vmatprep.subr.bf16.mxu1 %v906_v57  ;;  %v367_v56 = vld [vmem:[%s1641_s3 + $0x1f8] sm:$0xff]  ;;  %v364_v58 = vld [vmem:[%s1641_s3 + $0x1e0] sm:$0xff]  ;;  %v366_v59 = vld [vmem:[%s1641_s3 + $0x1f0] sm:$0xff] }
  0x1e   :  { %v944_v60 = vpack.c.bf16 %v366_v59, %v364_v58  ;;  %v589_v61 = vld [vmem:[%s1642_s5 + $0x80] sm:$0xff]  ;;  %v574_v1 = vld [vmem:[%s1642_s5 + $0x8] sm:$0xff]  ;;  %v591_v2 = vld [vmem:[%s1642_s5 + $0x90] sm:$0xff] }
  0x1f   :  { %v592_v4 = vld [vmem:[%s1642_s5 + $0x98] sm:$0xff]  ;;  %v593_v9 = vld [vmem:[%s1642_s5 + $0xa0] sm:$0xff]  ;;  %v594_v10 = vld [vmem:[%s1642_s5 + $0xa8] sm:$0xff] }
  0x20   :  { %782 = vmatmul.mubr.msk.f32.gmra.mrb[10].mxu0 %vm62_vm0, %v31_v55  ;;  %909 = vmatpush1.bf16.msra.mxu1 %v908_v63  ;;  %v940_v55 = vpack.c.bf16 %v362_v54, %v360_v53  ;;  %v573_v63 = vld [vmem:[%s1642_s5] sm:$0xff]  ;;  %v1370_v12 = vpack.c.bf16 %v594_v10, %v593_v9  ;;  %v596_v16 = vld [vmem:[%s1642_s5 + $0xb8] sm:$0xff]  ;;  %v579_v19 = vld [vmem:[%s1642_s5 + $0x30] sm:$0xff] }
  0x21   :  { %211 = vmatprep.mubr.f32.mxu0 %v995_v3  ;;  %911 = vmatprep.subr.bf16.mxu1 %v910_v0  ;;  %v1350_v5 = vpack.c.bf16 %v574_v1, %v573_v63  ;;  %v581_v25 = vld [vmem:[%s1642_s5 + $0x40] sm:$0xff]  ;;  %v582_v26 = vld [vmem:[%s1642_s5 + $0x48] sm:$0xff]  ;;  %v583_v31 = vld [vmem:[%s1642_s5 + $0x50] sm:$0xff] }
  0x22   :  { %v584_v32 = vld [vmem:[%s1642_s5 + $0x58] sm:$0xff]  ;;  %v601_v33 = vld [vmem:[%s1642_s5 + $0xe0] sm:$0xff]  ;;  %v586_v38 = vld [vmem:[%s1642_s5 + $0x68] sm:$0xff] }
  0x23   :  { %v585_v37 = vld [vmem:[%s1642_s5 + $0x60] sm:$0xff] }
  0x24   :  { %783 = vmatmul.mubr.msk.f32.gmra.mrb[12].mxu0 %vm62_vm0, %v32_v62  ;;  %913 = vmatpush1.bf16.msra.mxu1 %v912_v7  ;;  %v590_v62 = vld [vmem:[%s1642_s5 + $0x88] sm:$0xff]  ;;  %v575_v7 = vld [vmem:[%s1642_s5 + $0x10] sm:$0xff]  ;;  %v1451_v39 = vpack.c.bf16 %v586_v38, %v585_v37 }
  0x25   :  { %217 = vmatprep.mubr.f32.mxu0 %v995_v3  ;;  %915 = vmatprep.subr.bf16.mxu1 %v914_v8  ;;  %v946_v0 = vpack.c.bf16 %v590_v62, %v589_v61  ;;  %v576_v8 = vld [vmem:[%s1642_s5 + $0x18] sm:$0xff] }
  0x26   :  { %v1367_v11 = vpack.c.bf16 %v576_v8, %v575_v7 }
  0x27   :  { %947 = vmatprep.subr.bf16.mxu0 %v946_v0 }
  0x28   :  { %784 = vmatmul.mubr.msk.f32.gmra.mrb[14].mxu0 %vm62_vm0, %v33_v6  ;;  %917 = vmatpush1.bf16.msra.mxu1 %v916_v14  ;;  %v1352_v6 = vpack.c.bf16 %v592_v4, %v591_v2  ;;  %v578_v14 = vld [vmem:[%s1642_s5 + $0x28] sm:$0xff] }
  0x29   :  { %223 = vmatprep.mubr.f32.mxu0 %v995_v3  ;;  %919 = vmatprep.subr.bf16.mxu1 %v918_v15  ;;  %v595_v15 = vld [vmem:[%s1642_s5 + $0xb0] sm:$0xff] }
  0x2a   :  { %949 = vmatpush3.bf16.msra.mxu0 %v1350_v5  ;;  %v1388_v18 = vpack.c.bf16 %v596_v16, %v595_v15 }
  0x2b   :  { %951 = vmatprep.subr.bf16.mxu0 %v1352_v6 }
  0x2c   :  { %785 = vmatmul.mubr.msk.f32.gmra.mrb[16].mxu0 %vm62_vm0, %v34_v13  ;;  %921 = vmatpush1.bf16.msra.mxu1 %v920_v21  ;;  %v577_v13 = vld [vmem:[%s1642_s5 + $0x20] sm:$0xff] }
  0x2d   :  { %229 = vmatprep.mubr.f32.mxu0 %v995_v3  ;;  %923 = vmatprep.subr.bf16.mxu1 %v922_v22  ;;  %v1385_v17 = vpack.c.bf16 %v578_v14, %v577_v13  ;;  %v597_v21 = vld [vmem:[%s1642_s5 + $0xc0] sm:$0xff]  ;;  %v598_v22 = vld [vmem:[%s1642_s5 + $0xc8] sm:$0xff] }
  0x2e   :  { %953 = vmatpush3.bf16.msra.mxu0 %v1367_v11  ;;  %v1406_v24 = vpack.c.bf16 %v598_v22, %v597_v21 }
  0x2f   :  { %955 = vmatprep.subr.bf16.mxu0 %v1370_v12 }
  0x30   :  { %786 = vmatmul.mubr.msk.f32.gmra.mrb[18].mxu0 %vm62_vm0, %v35_v20  ;;  %925 = vmatpush1.bf16.msra.mxu1 %v924_v28  ;;  %v580_v20 = vld [vmem:[%s1642_s5 + $0x38] sm:$0xff] }
  0x31   :  { %235 = vmatprep.mubr.f32.mxu0 %v995_v3  ;;  %927 = vmatprep.subr.bf16.mxu1 %v926_v29  ;;  %v1403_v23 = vpack.c.bf16 %v580_v20, %v579_v19  ;;  %v600_v28 = vld [vmem:[%s1642_s5 + $0xd8] sm:$0xff]  ;;  %v1421_v29 = vpack.c.bf16 %v582_v26, %v581_v25 }
  0x32   :  { %957 = vmatpush3.bf16.msra.mxu0 %v1385_v17 }
  0x33   :  { %959 = vmatprep.subr.bf16.mxu0 %v1388_v18 }
  0x34   :  { %787 = vmatmul.mubr.msk.f32.gmra.mrb[20].mxu0 %vm62_vm0, %v36_v27  ;;  %929 = vmatpush1.bf16.msra.mxu1 %v928_v35  ;;  %v599_v27 = vld [vmem:[%s1642_s5 + $0xd0] sm:$0xff]  ;;  %v1439_v35 = vpack.c.bf16 %v584_v32, %v583_v31 }
  0x35   :  { %241 = vmatprep.mubr.f32.mxu0 %v995_v3  ;;  %931 = vmatprep.subr.bf16.mxu1 %v930_v36  ;;  %v1424_v30 = vpack.c.bf16 %v600_v28, %v599_v27 }
  0x36   :  { %961 = vmatpush3.bf16.msra.mxu0 %v1403_v23 }
  0x37   :  { %963 = vmatprep.subr.bf16.mxu0 %v1406_v24 }
  0x38   :  { %788 = vmatmul.mubr.msk.f32.gmra.mrb[22].mxu0 %vm62_vm0, %v37_v34  ;;  %933 = vmatpush1.bf16.msra.mxu1 %v932_v42  ;;  %v602_v34 = vld [vmem:[%s1642_s5 + $0xe8] sm:$0xff] }
  0x39   :  { %247 = vmatprep.mubr.f32.mxu0 %v995_v3  ;;  %935 = vmatprep.subr.bf16.mxu1 %v934_v43  ;;  %v1442_v36 = vpack.c.bf16 %v602_v34, %v601_v33  ;;  %v50_v43 = vld [vmem:[%s1643_s2] sm:$0x3] }
  0x3a   :  { %965 = vmatpush3.bf16.msra.mxu0 %v1421_v29 }
  0x3b   :  { %967 = vmatprep.subr.bf16.mxu0 %v1424_v30 }
  0x3c   :  { %789 = vmatmul.mubr.msk.f32.gmra.mrb[24].mxu0 %vm62_vm0, %v38_v41  ;;  %937 = vmatpush1.bf16.msra.mxu1 %v936_v49  ;;  %v1455_v41 = vshrl.u32 %v52_v40, 7 }
  0x3d   :  { %253 = vmatprep.mubr.f32.mxu0 %v995_v3  ;;  %939 = vmatprep.subr.bf16.mxu1 %v938_v50 }
  0x3e   :  { %969 = vmatpush3.bf16.msra.mxu0 %v1439_v35  ;;  %v54_v42 = vsub.s32 0, %v1455_v41  ;;  %v58_v44 = vsub.s32 1, %v1455_v41 }
  0x3f   :  { %971 = vmatprep.subr.bf16.mxu0 %v1442_v36 }
  0x40   :  { %790 = vmatmul.mubr.msk.f32.gmra.mrb[26].mxu0 %vm62_vm0, %v39_v48  ;;  %941 = vmatpush1.bf16.msra.mxu1 %v940_v55  ;;  %v1464_v45 = vrot.slane %v50_v43, %v54_v42  ;;  %v1468_v46 = vrot.slane %v50_v43, %v58_v44 }
  0x41   :  { %259 = vmatprep.mubr.f32.mxu0 %v995_v3 }
  0x42   :  { %973 = vmatpush3.bf16.msra.mxu0 %v1451_v39 }
  0x44   :  { %791 = vmatmul.mubr.msk.f32.gmra.mrb[28].mxu0 %vm62_vm0, %v40_v51 }
  0x45   :  { %265 = vmatprep.mubr.f32.mxu0 %v995_v3  ;;  %v365_v3 = vld [vmem:[%s1641_s3 + $0x1e8] sm:$0xff] }
  0x46   :  { %v942_v57 = vpack.c.bf16 %v367_v56, %v365_v3 }
  0x48   :  { %792 = vmatmul.mubr.msk.f32.gmra.mrb[30].mxu0 %vm62_vm0, %v41_v52  ;;  %943 = vmatprep.subr.bf16.mxu1 %v942_v57 }
  0x49   :  { %945 = vmatpush1.bf16.msra.mxu1 %v944_v60 }
  0x4a   :  { %978 = vmatprep.subr.bf16.mxu1 %v946_v0 }
  0xdf   :  { %v177_v47 = vpop.f32.mrb[0].mxu0 }
  0xe0   :  { %v178_v48 = vadd.f32 %v177_v47, %v1464_v45  ;;  %v179_v49 = vpop.f32.mrb[1].mxu0 }
  0xe1   :  { %v180_v50 = vadd.f32 %v179_v49, %v1468_v46 }
  0xe2   :  { %v272_v53 = vmax.f32 %v178_v48, 0.0 }
  0xe3   :  { %v183_v51 = vpop.f32.mrb[2].mxu0  ;;  %v273_v52 = vmax.f32 %v180_v50, 0.0 }
  0xe4   :  { %v184_v54 = vadd.f32 %v183_v51, %v1464_v45  ;;  %v185_v55 = vpop.f32.mrb[3].mxu0 }
  0xe5   :  { %v186_v3 = vadd.f32 %v185_v55, %v1468_v46  ;;  %444 = vmatprep.mubr.f32.mxu1 %v273_v52 }
  0xe6   :  { %445 = vmatmul.mubr.f32.vlgmr.msra.gmra.mrb[0].mxu1 %v272_v53  ;;  %v274_v58 = vmax.f32 %v184_v54, 0.0 }
  0xe7   :  { %v275_v56 = vmax.f32 %v186_v3, 0.0  ;;  %v189_v57 = vpop.f32.mrb[4].mxu0  ;;  %986 = vmatpush3.bf16.msra.mxu1 %v1350_v5 }
  0xe8   :  { %v190_v59 = vadd.f32 %v189_v57, %v1464_v45  ;;  %v191_v60 = vpop.f32.mrb[5].mxu0  ;;  %979 = vmatprep.subr.bf16.mxu1 %v1352_v6 }
  0xe9   :  { %v192_v61 = vadd.f32 %v191_v60, %v1468_v46  ;;  %450 = vmatprep.mubr.f32.mxu1 %v275_v56 }
  0xea   :  { %451 = vmatmul.mubr.f32.gmra.mrb[2].mxu1 %v274_v58  ;;  %v276_v0 = vmax.f32 %v190_v59, 0.0 }
  0xeb   :  { %v277_v62 = vmax.f32 %v192_v61, 0.0  ;;  %v195_v63 = vpop.f32.mrb[6].mxu0  ;;  %987 = vmatpush3.bf16.msra.mxu1 %v1367_v11 }
  0xec   :  { %v196_v1 = vadd.f32 %v195_v63, %v1464_v45  ;;  %v197_v2 = vpop.f32.mrb[7].mxu0  ;;  %980 = vmatprep.subr.bf16.mxu1 %v1370_v12 }
  0xed   :  { %v198_v4 = vadd.f32 %v197_v2, %v1468_v46  ;;  %456 = vmatprep.mubr.f32.mxu1 %v277_v62 }
  0xee   :  { %457 = vmatmul.mubr.f32.gmra.mrb[4].mxu1 %v276_v0  ;;  %v278_v7 = vmax.f32 %v196_v1, 0.0 }
  0xef   :  { %v279_v5 = vmax.f32 %v198_v4, 0.0  ;;  %v201_v6 = vpop.f32.mrb[8].mxu0  ;;  %988 = vmatpush3.bf16.msra.mxu1 %v1385_v17 }
  0xf0   :  { %v202_v8 = vadd.f32 %v201_v6, %v1464_v45  ;;  %v203_v9 = vpop.f32.mrb[9].mxu0  ;;  %981 = vmatprep.subr.bf16.mxu1 %v1388_v18 }
  0xf1   :  { %v204_v10 = vadd.f32 %v203_v9, %v1468_v46  ;;  %462 = vmatprep.mubr.f32.mxu1 %v279_v5 }
  0xf2   :  { %463 = vmatmul.mubr.f32.gmra.mrb[6].mxu1 %v278_v7  ;;  %v280_v13 = vmax.f32 %v202_v8, 0.0 }
  0xf3   :  { %v281_v11 = vmax.f32 %v204_v10, 0.0  ;;  %v207_v12 = vpop.f32.mrb[10].mxu0  ;;  %989 = vmatpush3.bf16.msra.mxu1 %v1403_v23 }
  0xf4   :  { %v208_v14 = vadd.f32 %v207_v12, %v1464_v45  ;;  %v209_v15 = vpop.f32.mrb[11].mxu0  ;;  %982 = vmatprep.subr.bf16.mxu1 %v1406_v24 }
  0xf5   :  { %v210_v16 = vadd.f32 %v209_v15, %v1468_v46  ;;  %468 = vmatprep.mubr.f32.mxu1 %v281_v11 }
  0xf6   :  { %469 = vmatmul.mubr.f32.gmra.mrb[8].mxu1 %v280_v13  ;;  %v282_v19 = vmax.f32 %v208_v14, 0.0 }
  0xf7   :  { %v283_v17 = vmax.f32 %v210_v16, 0.0  ;;  %v213_v18 = vpop.f32.mrb[12].mxu0  ;;  %990 = vmatpush3.bf16.msra.mxu1 %v1421_v29 }
  0xf8   :  { %v214_v20 = vadd.f32 %v213_v18, %v1464_v45  ;;  %v215_v21 = vpop.f32.mrb[13].mxu0  ;;  %983 = vmatprep.subr.bf16.mxu1 %v1424_v30 }
  0xf9   :  { %v216_v22 = vadd.f32 %v215_v21, %v1468_v46  ;;  %474 = vmatprep.mubr.f32.mxu1 %v283_v17  ;;  %v604_v21 = vld [vmem:[%s1642_s5 + $0xf8] sm:$0xff] }
  0xfa   :  { %475 = vmatmul.mubr.f32.gmra.mrb[10].mxu1 %v282_v19  ;;  %v284_v25 = vmax.f32 %v214_v20, 0.0  ;;  %v603_v20 = vld [vmem:[%s1642_s5 + $0xf0] sm:$0xff] }
  0xfb   :  { %v285_v23 = vmax.f32 %v216_v22, 0.0  ;;  %v219_v24 = vpop.f32.mrb[14].mxu0  ;;  %991 = vmatpush3.bf16.msra.mxu1 %v1439_v35  ;;  %v974_v22 = vpack.c.bf16 %v604_v21, %v603_v20 }
  0xfc   :  { %v220_v26 = vadd.f32 %v219_v24, %v1464_v45  ;;  %v221_v27 = vpop.f32.mrb[15].mxu0  ;;  %984 = vmatprep.subr.bf16.mxu1 %v1442_v36  ;;  %v368_v24 = vld [vmem:[%s1644_s4] sm:$0x3] }
  0xfd   :  { %v222_v28 = vadd.f32 %v221_v27, %v1468_v46  ;;  %480 = vmatprep.mubr.f32.mxu1 %v285_v23  ;;  %975 = vmatprep.subr.bf16.mxu0 %v974_v22 }
  0xfe   :  { %481 = vmatmul.mubr.f32.gmra.mrb[12].mxu1 %v284_v25  ;;  %v286_v31 = vmax.f32 %v220_v26, 0.0  ;;  %v1532_v25 = vrot.slane %v368_v24, %v54_v42  ;;  %v1536_v26 = vrot.slane %v368_v24, %v58_v44 }
  0xff   :  { %v287_v29 = vmax.f32 %v222_v28, 0.0  ;;  %v225_v30 = vpop.f32.mrb[16].mxu0  ;;  %992 = vmatpush3.bf16.msra.mxu1 %v1451_v39 }
 0x100   :  { %v226_v32 = vadd.f32 %v225_v30, %v1464_v45  ;;  %v227_v33 = vpop.f32.mrb[17].mxu0  ;;  %985 = vmatprep.subr.bf16.mxu1 %v974_v22 }
 0x101   :  { %v228_v34 = vadd.f32 %v227_v33, %v1468_v46  ;;  %486 = vmatprep.mubr.f32.mxu1 %v287_v29 }
 0x102   :  { %487 = vmatmul.mubr.f32.gmra.mrb[14].mxu1 %v286_v31  ;;  %v288_v38 = vmax.f32 %v226_v32, 0.0 }
 0x103   :  { %v289_v35 = vmax.f32 %v228_v34, 0.0  ;;  %v231_v37 = vpop.f32.mrb[18].mxu0 }
 0x104   :  { %v232_v36 = vadd.f32 %v231_v37, %v1464_v45  ;;  %v233_v40 = vpop.f32.mrb[19].mxu0 }
 0x105   :  { %v234_v43 = vadd.f32 %v233_v40, %v1468_v46  ;;  %492 = vmatprep.mubr.f32.mxu1 %v289_v35 }
 0x106   :  { %493 = vmatmul.mubr.f32.gmra.mrb[16].mxu1 %v288_v38  ;;  %v290_v48 = vmax.f32 %v232_v36, 0.0 }
 0x107   :  { %v291_v47 = vmax.f32 %v234_v43, 0.0  ;;  %v237_v39 = vpop.f32.mrb[20].mxu0 }
 0x108   :  { %v238_v49 = vadd.f32 %v237_v39, %v1464_v45  ;;  %v239_v50 = vpop.f32.mrb[21].mxu0 }
 0x109   :  { %v240_v51 = vadd.f32 %v239_v50, %v1468_v46  ;;  %498 = vmatprep.mubr.f32.mxu1 %v291_v47 }
 0x10a   :  { %499 = vmatmul.mubr.f32.gmra.mrb[18].mxu1 %v290_v48  ;;  %v292_v54 = vmax.f32 %v238_v49, 0.0 }
 0x10b   :  { %v293_v52 = vmax.f32 %v240_v51, 0.0  ;;  %v243_v53 = vpop.f32.mrb[22].mxu0 }
 0x10c   :  { %v244_v55 = vadd.f32 %v243_v53, %v1464_v45  ;;  %v245_v3 = vpop.f32.mrb[23].mxu0 }
 0x10d   :  { %v246_v56 = vadd.f32 %v245_v3, %v1468_v46  ;;  %504 = vmatprep.mubr.f32.mxu1 %v293_v52 }
 0x10e   :  { %505 = vmatmul.mubr.f32.gmra.mrb[20].mxu1 %v292_v54  ;;  %v294_v59 = vmax.f32 %v244_v55, 0.0 }
 0x10f   :  { %v295_v57 = vmax.f32 %v246_v56, 0.0  ;;  %v249_v58 = vpop.f32.mrb[24].mxu0 }
 0x110   :  { %v250_v60 = vadd.f32 %v249_v58, %v1464_v45  ;;  %v251_v61 = vpop.f32.mrb[25].mxu0 }
 0x111   :  { %v252_v62 = vadd.f32 %v251_v61, %v1468_v46  ;;  %510 = vmatprep.mubr.f32.mxu1 %v295_v57 }
 0x112   :  { %511 = vmatmul.mubr.f32.gmra.mrb[22].mxu1 %v294_v59  ;;  %v296_v1 = vmax.f32 %v250_v60, 0.0 }
 0x113   :  { %v297_v63 = vmax.f32 %v252_v62, 0.0  ;;  %v255_v0 = vpop.f32.mrb[26].mxu0 }
 0x114   :  { %v256_v2 = vadd.f32 %v255_v0, %v1464_v45  ;;  %v257_v4 = vpop.f32.mrb[27].mxu0 }
 0x115   :  { %v258_v5 = vadd.f32 %v257_v4, %v1468_v46  ;;  %516 = vmatprep.mubr.f32.mxu1 %v297_v63 }
 0x116   :  { %517 = vmatmul.mubr.f32.gmra.mrb[24].mxu1 %v296_v1  ;;  %v298_v8 = vmax.f32 %v256_v2, 0.0 }
 0x117   :  { %v299_v6 = vmax.f32 %v258_v5, 0.0  ;;  %v261_v7 = vpop.f32.mrb[28].mxu0 }
 0x118   :  { %v262_v9 = vadd.f32 %v261_v7, %v1464_v45  ;;  %v263_v10 = vpop.f32.mrb[29].mxu0 }
 0x119   :  { %v264_v11 = vadd.f32 %v263_v10, %v1468_v46  ;;  %522 = vmatprep.mubr.f32.mxu1 %v299_v6 }
 0x11a   :  { %523 = vmatmul.mubr.f32.gmra.mrb[26].mxu1 %v298_v8  ;;  %v300_v14 = vmax.f32 %v262_v9, 0.0 }
 0x11b   :  { %v301_v12 = vmax.f32 %v264_v11, 0.0  ;;  %v267_v13 = vpop.f32.mrb[30].mxu0 }
 0x11c   :  { %v268_v15 = vadd.f32 %v267_v13, %v1464_v45  ;;  %v269_v16 = vpop.f32.mrb[31].mxu0  ;;  %v587_v45 = vld [vmem:[%s1642_s5 + $0x70] sm:$0xff] }
 0x11d   :  { %v270_v17 = vadd.f32 %v269_v16, %v1468_v46  ;;  %528 = vmatprep.mubr.f32.mxu1 %v301_v12  ;;  %v588_v46 = vld [vmem:[%s1642_s5 + $0x78] sm:$0xff] }
 0x11e   :  { %529 = vmatmul.mubr.f32.gmra.mrb[28].mxu1 %v300_v14  ;;  %v302_v19 = vmax.f32 %v268_v15, 0.0  ;;  %v976_v23 = vpack.c.bf16 %v588_v46, %v587_v45 }
 0x11f   :  { %v303_v18 = vmax.f32 %v270_v17, 0.0 }
 0x120   :  { %977 = vmatpush3.bf16.msra.mxu0 %v976_v23  ;;  %993 = vmatpush3.bf16.msra.mxu1 %v976_v23 }
 0x121   :  { %534 = vmatprep.mubr.f32.mxu1 %v303_v18 }
 0x122   :  { %535 = vmatmul.mubr.f32.gmra.mrb[30].mxu1 %v302_v19 }
 0x1b9   :  { %v446_v27 = vpop.f32.mrb[0].mxu1 }
 0x1ba   :  { %v447_v28 = vadd.f32 %v446_v27, %v1532_v25  ;;  %v448_v29 = vpop.f32.mrb[1].mxu1 }
 0x1bb   :  { %v449_v30 = vadd.f32 %v448_v29, %v1536_v26 }
 0x1bc   :  { %v541_v33 = vmax.f32 %v447_v28, 0.0 }
 0x1bd   :  { %v542_v31 = vmax.f32 %v449_v30, 0.0  ;;  %v452_v32 = vpop.f32.mrb[2].mxu1 }
 0x1be   :  { %v453_v34 = vadd.f32 %v452_v32, %v1532_v25  ;;  %v454_v35 = vpop.f32.mrb[3].mxu1 }
 0x1bf   :  { %v455_v37 = vadd.f32 %v454_v35, %v1536_v26  ;;  %676 = vmatprep.mubr.f32.mxu0 %v542_v31 }
 0x1c0   :  { %677 = vmatmul.mubr.f32.vlgmr.msra.gmra.mrb[32].mxu0 %v541_v33  ;;  %v543_v44 = vmax.f32 %v453_v34, 0.0 }
 0x1c1   :  { %v544_v42 = vmax.f32 %v455_v37, 0.0  ;;  %v458_v41 = vpop.f32.mrb[4].mxu1 }
 0x1c2   :  { %v459_v38 = vadd.f32 %v458_v41, %v1532_v25  ;;  %v460_v36 = vpop.f32.mrb[5].mxu1 }
 0x1c3   :  { %v461_v40 = vadd.f32 %v460_v36, %v1536_v26  ;;  %681 = vmatprep.mubr.f32.mxu0 %v544_v42 }
 0x1c4   :  { %682 = vmatmul.mubr.f32.gmra.mrb[34].mxu0 %v543_v44  ;;  %v545_v39 = vmax.f32 %v459_v38, 0.0 }
 0x1c5   :  { %v546_v43 = vmax.f32 %v461_v40, 0.0  ;;  %v464_v47 = vpop.f32.mrb[6].mxu1 }
 0x1c6   :  { %v465_v48 = vadd.f32 %v464_v47, %v1532_v25  ;;  %v466_v49 = vpop.f32.mrb[7].mxu1 }
 0x1c7   :  { %v467_v50 = vadd.f32 %v466_v49, %v1536_v26  ;;  %686 = vmatprep.mubr.f32.mxu0 %v546_v43 }
 0x1c8   :  { %687 = vmatmul.mubr.f32.gmra.mrb[36].mxu0 %v545_v39  ;;  %v547_v53 = vmax.f32 %v465_v48, 0.0 }
 0x1c9   :  { %v548_v51 = vmax.f32 %v467_v50, 0.0  ;;  %v470_v52 = vpop.f32.mrb[8].mxu1 }
 0x1ca   :  { %v471_v54 = vadd.f32 %v470_v52, %v1532_v25  ;;  %v472_v55 = vpop.f32.mrb[9].mxu1 }
 0x1cb   :  { %v473_v3 = vadd.f32 %v472_v55, %v1536_v26  ;;  %691 = vmatprep.mubr.f32.mxu0 %v548_v51 }
 0x1cc   :  { %692 = vmatmul.mubr.f32.gmra.mrb[38].mxu0 %v547_v53  ;;  %v549_v58 = vmax.f32 %v471_v54, 0.0 }
 0x1cd   :  { %v550_v56 = vmax.f32 %v473_v3, 0.0  ;;  %v476_v57 = vpop.f32.mrb[10].mxu1 }
 0x1ce   :  { %v477_v59 = vadd.f32 %v476_v57, %v1532_v25  ;;  %v478_v60 = vpop.f32.mrb[11].mxu1 }
 0x1cf   :  { %v479_v61 = vadd.f32 %v478_v60, %v1536_v26  ;;  %696 = vmatprep.mubr.f32.mxu0 %v550_v56 }
 0x1d0   :  { %697 = vmatmul.mubr.f32.gmra.mrb[40].mxu0 %v549_v58  ;;  %v551_v0 = vmax.f32 %v477_v59, 0.0 }
 0x1d1   :  { %v552_v62 = vmax.f32 %v479_v61, 0.0  ;;  %v482_v63 = vpop.f32.mrb[12].mxu1 }
 0x1d2   :  { %v483_v1 = vadd.f32 %v482_v63, %v1532_v25  ;;  %v484_v2 = vpop.f32.mrb[13].mxu1  ;;  %v1573_v63 = vld [vmem:[%s1645_s6] ss:$0 sm:$0xff] }
 0x1d3   :  { %v485_v4 = vadd.f32 %v484_v2, %v1536_v26  ;;  %701 = vmatprep.mubr.f32.mxu0 %v552_v62 }
 0x1d4   :  { %702 = vmatmul.mubr.f32.gmra.mrb[42].mxu0 %v551_v0  ;;  %v553_v7 = vmax.f32 %v483_v1, 0.0 }
 0x1d5   :  { %v554_v5 = vmax.f32 %v485_v4, 0.0  ;;  %v488_v6 = vpop.f32.mrb[14].mxu1 }
 0x1d6   :  { %v489_v8 = vadd.f32 %v488_v6, %v1532_v25  ;;  %v490_v9 = vpop.f32.mrb[15].mxu1 }
 0x1d7   :  { %v491_v10 = vadd.f32 %v490_v9, %v1536_v26  ;;  %706 = vmatprep.mubr.f32.mxu0 %v554_v5 }
 0x1d8   :  { %707 = vmatmul.mubr.f32.gmra.mrb[44].mxu0 %v553_v7  ;;  %v555_v13 = vmax.f32 %v489_v8, 0.0 }
 0x1d9   :  { %v556_v11 = vmax.f32 %v491_v10, 0.0  ;;  %v494_v12 = vpop.f32.mrb[16].mxu1 }
 0x1da   :  { %v495_v14 = vadd.f32 %v494_v12, %v1532_v25  ;;  %v496_v15 = vpop.f32.mrb[17].mxu1 }
 0x1db   :  { %v497_v16 = vadd.f32 %v496_v15, %v1536_v26  ;;  %711 = vmatprep.mubr.f32.mxu0 %v556_v11 }
 0x1dc   :  { %712 = vmatmul.mubr.f32.gmra.mrb[46].mxu0 %v555_v13  ;;  %v557_v19 = vmax.f32 %v495_v14, 0.0 }
 0x1dd   :  { %v558_v17 = vmax.f32 %v497_v16, 0.0  ;;  %v500_v18 = vpop.f32.mrb[18].mxu1 }
 0x1de   :  { %v501_v20 = vadd.f32 %v500_v18, %v1532_v25  ;;  %v502_v21 = vpop.f32.mrb[19].mxu1 }
 0x1df   :  { %v503_v22 = vadd.f32 %v502_v21, %v1536_v26  ;;  %716 = vmatprep.mubr.f32.mxu0 %v558_v17 }
 0x1e0   :  { %717 = vmatmul.mubr.f32.gmra.mrb[48].mxu0 %v557_v19  ;;  %v559_v23 = vmax.f32 %v501_v20, 0.0 }
 0x1e1   :  { %v560_v45 = vmax.f32 %v503_v22, 0.0  ;;  %v506_v46 = vpop.f32.mrb[20].mxu1 }
 0x1e2   :  { %v507_v24 = vadd.f32 %v506_v46, %v1532_v25  ;;  %v508_v27 = vpop.f32.mrb[21].mxu1 }
 0x1e3   :  { %v509_v28 = vadd.f32 %v508_v27, %v1536_v26  ;;  %721 = vmatprep.mubr.f32.mxu0 %v560_v45 }
 0x1e4   :  { %722 = vmatmul.mubr.f32.gmra.mrb[50].mxu0 %v559_v23  ;;  %v561_v31 = vmax.f32 %v507_v24, 0.0 }
 0x1e5   :  { %v562_v29 = vmax.f32 %v509_v28, 0.0  ;;  %v512_v30 = vpop.f32.mrb[22].mxu1 }
 0x1e6   :  { %v513_v32 = vadd.f32 %v512_v30, %v1532_v25  ;;  %v514_v33 = vpop.f32.mrb[23].mxu1 }
 0x1e7   :  { %v515_v34 = vadd.f32 %v514_v33, %v1536_v26  ;;  %726 = vmatprep.mubr.f32.mxu0 %v562_v29 }
 0x1e8   :  { %727 = vmatmul.mubr.f32.gmra.mrb[52].mxu0 %v561_v31  ;;  %v563_v42 = vmax.f32 %v513_v32, 0.0 }
 0x1e9   :  { %v564_v35 = vmax.f32 %v515_v34, 0.0  ;;  %v518_v37 = vpop.f32.mrb[24].mxu1 }
 0x1ea   :  { %v519_v41 = vadd.f32 %v518_v37, %v1532_v25  ;;  %v520_v44 = vpop.f32.mrb[25].mxu1 }
 0x1eb   :  { %v521_v38 = vadd.f32 %v520_v44, %v1536_v26  ;;  %731 = vmatprep.mubr.f32.mxu0 %v564_v35 }
 0x1ec   :  { %732 = vmatmul.mubr.f32.gmra.mrb[54].mxu0 %v563_v42  ;;  %v565_v43 = vmax.f32 %v519_v41, 0.0 }
 0x1ed   :  { %v566_v36 = vmax.f32 %v521_v38, 0.0  ;;  %v524_v40 = vpop.f32.mrb[26].mxu1 }
 0x1ee   :  { %v525_v47 = vadd.f32 %v524_v40, %v1532_v25  ;;  %v526_v39 = vpop.f32.mrb[27].mxu1 }
 0x1ef   :  { %v527_v48 = vadd.f32 %v526_v39, %v1536_v26  ;;  %736 = vmatprep.mubr.f32.mxu0 %v566_v36 }
 0x1f0   :  { %737 = vmatmul.mubr.f32.gmra.mrb[56].mxu0 %v565_v43  ;;  %v567_v51 = vmax.f32 %v525_v47, 0.0 }
 0x1f1   :  { %v568_v49 = vmax.f32 %v527_v48, 0.0  ;;  %v530_v50 = vpop.f32.mrb[28].mxu1 }
 0x1f2   :  { %v531_v52 = vadd.f32 %v530_v50, %v1532_v25  ;;  %v532_v53 = vpop.f32.mrb[29].mxu1 }
 0x1f3   :  { %v533_v54 = vadd.f32 %v532_v53, %v1536_v26  ;;  %741 = vmatprep.mubr.f32.mxu0 %v568_v49 }
 0x1f4   :  { %742 = vmatmul.mubr.f32.gmra.mrb[58].mxu0 %v567_v51  ;;  %v569_v56 = vmax.f32 %v531_v52, 0.0 }
 0x1f5   :  { %v570_v55 = vmax.f32 %v533_v54, 0.0  ;;  %v536_v3 = vpop.f32.mrb[30].mxu1 }
 0x1f6   :  { %v537_v57 = vadd.f32 %v536_v3, %v1532_v25  ;;  %v538_v58 = vpop.f32.mrb[31].mxu1 }
 0x1f7   :  { %v539_v59 = vadd.f32 %v538_v58, %v1536_v26  ;;  %746 = vmatprep.mubr.f32.mxu0 %v570_v55 }
 0x1f8   :  { %747 = vmatmul.mubr.f32.gmra.mrb[60].mxu0 %v569_v56  ;;  %v571_v61 = vmax.f32 %v537_v57, 0.0 }
 0x1f9   :  { %v572_v60 = vmax.f32 %v539_v59, 0.0 }
 0x1fb   :  { %751 = vmatprep.mubr.f32.mxu1 %v572_v60 }
 0x1fc   :  { %752 = vmatmul.mubr.f32.vlgmr.msra.gmra.mrb[32].mxu1 %v571_v61 }
 0x293   :  { %v826_v62 = vpop.f32.mrb[32].mxu0 }
 0x294   :  { %v827_v0 = vpop.f32.mrb[33].mxu0 }
 0x295   :  { %v828_v1 = vadd.f32 %v827_v0, %v826_v62 }
 0x297   :  { %v679_v2 = vadd.f32 %v828_v1, %v1573_v63  ;;  %v829_v25 = vpop.f32.mrb[34].mxu0 }
 0x298   :  { %v830_v4 = vpop.f32.mrb[35].mxu0 }
 0x299   :  { %757 = vst [vmem:[%s1646_s7] sm:$0xff] %v679_v2  ;;  %v831_v26 = vadd.f32 %v830_v4, %v829_v25 }
 0x29b   :  { %v684_v5 = vadd.f32 %v831_v26, %v1573_v63  ;;  %v832_v6 = vpop.f32.mrb[36].mxu0 }
 0x29c   :  { %v833_v7 = vpop.f32.mrb[37].mxu0 }
 0x29d   :  { %758 = vst [vmem:[%s1646_s7 + $0x8] sm:$0xff] %v684_v5  ;;  %v834_v8 = vadd.f32 %v833_v7, %v832_v6 }
 0x29f   :  { %v689_v9 = vadd.f32 %v834_v8, %v1573_v63  ;;  %v835_v10 = vpop.f32.mrb[38].mxu0 }
 0x2a0   :  { %v836_v11 = vpop.f32.mrb[39].mxu0 }
 0x2a1   :  { %759 = vst [vmem:[%s1646_s7 + $0x10] sm:$0xff] %v689_v9  ;;  %v837_v12 = vadd.f32 %v836_v11, %v835_v10 }
 0x2a3   :  { %v694_v13 = vadd.f32 %v837_v12, %v1573_v63  ;;  %v838_v14 = vpop.f32.mrb[40].mxu0 }
 0x2a4   :  { %v839_v15 = vpop.f32.mrb[41].mxu0 }
 0x2a5   :  { %760 = vst [vmem:[%s1646_s7 + $0x18] sm:$0xff] %v694_v13  ;;  %v840_v16 = vadd.f32 %v839_v15, %v838_v14 }
 0x2a7   :  { %v699_v17 = vadd.f32 %v840_v16, %v1573_v63  ;;  %v841_v18 = vpop.f32.mrb[42].mxu0 }
 0x2a8   :  { %v842_v19 = vpop.f32.mrb[43].mxu0 }
 0x2a9   :  { %761 = vst [vmem:[%s1646_s7 + $0x20] sm:$0xff] %v699_v17  ;;  %v843_v20 = vadd.f32 %v842_v19, %v841_v18 }
 0x2ab   :  { %v704_v21 = vadd.f32 %v843_v20, %v1573_v63  ;;  %v844_v22 = vpop.f32.mrb[44].mxu0 }
 0x2ac   :  { %v845_v45 = vpop.f32.mrb[45].mxu0 }
 0x2ad   :  { %762 = vst [vmem:[%s1646_s7 + $0x28] sm:$0xff] %v704_v21  ;;  %v846_v46 = vadd.f32 %v845_v45, %v844_v22 }
 0x2af   :  { %v709_v23 = vadd.f32 %v846_v46, %v1573_v63  ;;  %v847_v24 = vpop.f32.mrb[46].mxu0 }
 0x2b0   :  { %v848_v27 = vpop.f32.mrb[47].mxu0 }
 0x2b1   :  { %763 = vst [vmem:[%s1646_s7 + $0x30] sm:$0xff] %v709_v23  ;;  %v849_v28 = vadd.f32 %v848_v27, %v847_v24 }
 0x2b3   :  { %v714_v29 = vadd.f32 %v849_v28, %v1573_v63  ;;  %v850_v30 = vpop.f32.mrb[48].mxu0 }
 0x2b4   :  { %v851_v31 = vpop.f32.mrb[49].mxu0 }
 0x2b5   :  { %764 = vst [vmem:[%s1646_s7 + $0x38] sm:$0xff] %v714_v29  ;;  %v852_v32 = vadd.f32 %v851_v31, %v850_v30 }
 0x2b7   :  { %v719_v33 = vadd.f32 %v852_v32, %v1573_v63  ;;  %v853_v34 = vpop.f32.mrb[50].mxu0 }
 0x2b8   :  { %v854_v35 = vpop.f32.mrb[51].mxu0 }
 0x2b9   :  { %765 = vst [vmem:[%s1646_s7 + $0x40] sm:$0xff] %v719_v33  ;;  %v855_v37 = vadd.f32 %v854_v35, %v853_v34 }
 0x2bb   :  { %v724_v42 = vadd.f32 %v855_v37, %v1573_v63  ;;  %v856_v41 = vpop.f32.mrb[52].mxu0 }
 0x2bc   :  { %v857_v44 = vpop.f32.mrb[53].mxu0 }
 0x2bd   :  { %766 = vst [vmem:[%s1646_s7 + $0x48] sm:$0xff] %v724_v42  ;;  %v858_v38 = vadd.f32 %v857_v44, %v856_v41 }
 0x2bf   :  { %v729_v36 = vadd.f32 %v858_v38, %v1573_v63  ;;  %v859_v40 = vpop.f32.mrb[54].mxu0 }
 0x2c0   :  { %v860_v43 = vpop.f32.mrb[55].mxu0 }
 0x2c1   :  { %767 = vst [vmem:[%s1646_s7 + $0x50] sm:$0xff] %v729_v36  ;;  %v861_v47 = vadd.f32 %v860_v43, %v859_v40 }
 0x2c3   :  { %v734_v39 = vadd.f32 %v861_v47, %v1573_v63  ;;  %v862_v48 = vpop.f32.mrb[56].mxu0 }
 0x2c4   :  { %v863_v49 = vpop.f32.mrb[57].mxu0 }
 0x2c5   :  { %768 = vst [vmem:[%s1646_s7 + $0x58] sm:$0xff] %v734_v39  ;;  %v864_v50 = vadd.f32 %v863_v49, %v862_v48 }
 0x2c7   :  { %v739_v51 = vadd.f32 %v864_v50, %v1573_v63  ;;  %v865_v52 = vpop.f32.mrb[58].mxu0 }
 0x2c8   :  { %v866_v53 = vpop.f32.mrb[59].mxu0 }
 0x2c9   :  { %769 = vst [vmem:[%s1646_s7 + $0x60] sm:$0xff] %v739_v51  ;;  %v867_v54 = vadd.f32 %v866_v53, %v865_v52 }
 0x2cb   :  { %v744_v55 = vadd.f32 %v867_v54, %v1573_v63  ;;  %v868_v3 = vpop.f32.mrb[60].mxu0 }
 0x2cc   :  { %v869_v56 = vpop.f32.mrb[61].mxu0 }
 0x2cd   :  { %770 = vst [vmem:[%s1646_s7 + $0x68] sm:$0xff] %v744_v55  ;;  %v870_v57 = vadd.f32 %v869_v56, %v868_v3 }
 0x2cf   :  { %v749_v58 = vadd.f32 %v870_v57, %v1573_v63  ;;  %v871_v59 = vpop.f32.mrb[32].mxu1 }
 0x2d0   :  { %v872_v60 = vpop.f32.mrb[33].mxu1 }
 0x2d1   :  { %771 = vst [vmem:[%s1646_s7 + $0x70] sm:$0xff] %v749_v58  ;;  %v873_v61 = vadd.f32 %v872_v60, %v871_v59 }
 0x2d3   :  { %v754_v62 = vadd.f32 %v873_v61, %v1573_v63 }
 0x2d5   :  { %772 = vst [vmem:[%s1646_s7 + $0x78] sm:$0xff] %v754_v62 }

</bundles_post_ra>
